<compile_context>
chip_gen: v5e
topology: v5e:2x2
jax: 0.10.0
libtpu: 0.0.40
codegen_flags: <defaults>
</compile_context>

<pallas_src>
import functools

import jax
import jax.numpy as jnp
from jax.experimental import pallas as pl
from jax.experimental.pallas import tpu as pltpu


def mlp_kernel(x_ref, w1_ref, b1_ref, w2_ref, b2_ref, o_ref):
    tb = x_ref.shape[0]
    n_feat = x_ref.shape[1]
    n_hidden = w1_ref.shape[1]

    # ---- Layer 1: relu(x @ W1 + b1) with K = n_feat tiny -> VPU FMAs -------
    # h starts as the broadcast bias (single broadcast, hoisted out of the
    # unrolled feature loop), then accumulates one rank-1 update per feature.
    h = jnp.broadcast_to(b1_ref[...], (tb, n_hidden)).astype(jnp.float32)
    for k in range(n_feat):  # static, tiny unroll (n_feature == 2)
        h = h + x_ref[:, k:k + 1].astype(jnp.float32) * w1_ref[k:k + 1, :].astype(jnp.float32)
    h = jnp.maximum(h, 0.0)

    # ---- Layer 2: h @ W2_pad + b2_pad (lane-dense, 128-padded output) ------
    y = jnp.dot(h.astype(w2_ref.dtype), w2_ref[...],
                preferred_element_type=jnp.float32)
    y = y + b2_ref[...]                     # (TB, 128) + (1, 128) broadcast
    o_ref[...] = y.astype(o_ref.dtype)      # full-lane unmasked stores


@functools.partial(jax.jit, static_argnames=("batch_tile",))
def net_forward(x, w1, b1, w2, b2, *, batch_tile=512):
    """x: (B, n_feature); w1: (n_feature, n_hidden); b1: (1, n_hidden);
    w2: (n_hidden, n_output); b2: (1, n_output). Returns (B, n_output), f32."""
    B, F = x.shape
    H = w1.shape[1]
    n_out = w2.shape[1]

    # Lane-dense output: pad the output feature dim to a multiple of 128.
    n_pad = ((n_out + 127) // 128) * 128
    w2p = jnp.zeros((H, n_pad), dtype=w2.dtype).at[:, :n_out].set(w2)
    b2p = jnp.zeros((1, n_pad), dtype=b2.dtype).at[:, :n_out].set(b2)

    # Batch tiling: one grid step if B fits in a tile, otherwise 8-aligned
    # tiles on a "parallel" grid axis (weights stay resident across the grid).
    if B <= batch_tile:
        tb = B
        b_padded = B
    else:
        tb = batch_tile                      # multiple of 8
        b_padded = pl.cdiv(B, tb) * tb
    x_p = x if b_padded == B else jnp.zeros(
        (b_padded, F), dtype=x.dtype).at[:B, :].set(x)
    grid = (b_padded // tb,)

    flops = 2 * b_padded * (F * H + H * n_pad)
    bytes_accessed = 4 * (x_p.size + w1.size + b1.size + w2p.size + b2p.size
                          + b_padded * n_pad)

    out_padded = pl.pallas_call(
        mlp_kernel,
        out_shape=jax.ShapeDtypeStruct((b_padded, n_pad), jnp.float32),
        grid=grid,
        in_specs=[
            pl.BlockSpec((tb, F), lambda i: (i, 0)),   # x: tiled over batch
            pl.BlockSpec((F, H), lambda i: (0, 0)),    # W1: resident
            pl.BlockSpec((1, H), lambda i: (0, 0)),    # b1: resident
            pl.BlockSpec((H, n_pad), lambda i: (0, 0)),  # W2 (lane-padded)
            pl.BlockSpec((1, n_pad), lambda i: (0, 0)),  # b2 (lane-padded)
        ],
        out_specs=pl.BlockSpec((tb, n_pad), lambda i: (i, 0)),
        compiler_params=pltpu.CompilerParams(
            dimension_semantics=("parallel",)),
        cost_estimate=pl.CostEstimate(
            flops=flops, transcendentals=0, bytes_accessed=bytes_accessed),
    )(x_p, w1, b1, w2p, b2p)

    return out_padded[:B, :n_out]
    # TODO(synk): for large B/H deployments, cast x/W1/W2 to bf16 in this
    # wrapper (keeping f32 accumulation + f32 epilogue) for the MXU/HBM win.


if __name__ == "__main__":
    # Shapes consistent with the module: Net(n_feature=2, n_hidden=32, n_output=2)
    n_feature, n_hidden, n_output = 2, 32, 2
    batch = 16

    key = jax.random.PRNGKey(0)
    kx0, kx1, k1, kb1, k2, kb2 = jax.random.split(key, 6)

    # Inputs mimic the two Gaussian clusters around +/-2 from the script.
    x0 = 2.0 + jax.random.normal(kx0, (batch // 2, n_feature), dtype=jnp.float32)
    x1 = -2.0 + jax.random.normal(kx1, (batch // 2, n_feature), dtype=jnp.float32)
    x = jnp.concatenate([x0, x1], axis=0)

    # Deterministic parameter init (PyTorch Linear stores (out, in); transpose for kernel).
    w1_t = jax.random.normal(k1, (n_hidden, n_feature), dtype=jnp.float32) * 0.1
    b1 = jax.random.normal(kb1, (n_hidden,), dtype=jnp.float32) * 0.1
    w2_t = jax.random.normal(k2, (n_output, n_hidden), dtype=jnp.float32) * 0.1
    b2 = jax.random.normal(kb2, (n_output,), dtype=jnp.float32) * 0.1

    out = net_forward(x, w1_t.T, b1.reshape(1, -1), w2_t.T, b2.reshape(1, -1))
    out = jax.block_until_ready(out)

    # Reference check in plain JAX (same math as the PyTorch forward).
    ref = jnp.maximum(x @ w1_t.T + b1, 0.0) @ w2_t.T + b2
    assert out.shape == (batch, n_output)
    assert jnp.allclose(out, ref, atol=1e-5), "mismatch vs reference"

    print("KERNEL_OK")
</pallas_src>

<mosaic_0001>
module attributes {stable_mosaic.version = 11 : i64} {
  func.func @mlp_kernel(%arg0: i32, %arg1: memref<16x2xf32, #tpu.memory_space<vmem>>, %arg2: memref<2x32xf32, #tpu.memory_space<vmem>>, %arg3: memref<1x32xf32, #tpu.memory_space<vmem>>, %arg4: memref<32x128xf32, #tpu.memory_space<vmem>>, %arg5: memref<1x128xf32, #tpu.memory_space<vmem>>, %arg6: memref<16x128xf32, #tpu.memory_space<vmem>>) attributes {dimension_semantics = [#tpu.dimension_semantics<parallel>], iteration_bounds = array<i64: 1>, scalar_prefetch = 0 : i64, scratch_operands = 0 : i64, tpu.core_type = #tpu.core_type<tc>, window_params = [{transform_indices = @transform_0, window_bounds = array<i64: 16, 2>}, {pipeline_mode = #tpu.pipeline_mode<synchronous>, transform_indices = @transform_1, window_bounds = array<i64: 2, 32>}, {pipeline_mode = #tpu.pipeline_mode<synchronous>, transform_indices = @transform_2, window_bounds = array<i64: 1, 32>}, {pipeline_mode = #tpu.pipeline_mode<synchronous>, transform_indices = @transform_3, window_bounds = array<i64: 32, 128>}, {pipeline_mode = #tpu.pipeline_mode<synchronous>, transform_indices = @transform_4, window_bounds = array<i64: 1, 128>}, {transform_indices = @transform_5, window_bounds = array<i64: 16, 128>}]} {
    %c0 = arith.constant 0 : index
    %c0_0 = arith.constant 0 : index
    %0 = vector.load %arg3[%c0, %c0_0] : memref<1x32xf32, #tpu.memory_space<vmem>>, vector<1x32xf32>
    %1 = vector.shape_cast %0 : vector<1x32xf32> to vector<1x32xf32>
    %2 = vector.broadcast %1 : vector<1x32xf32> to vector<16x32xf32>
    %c0_1 = arith.constant 0 : index
    %c0_2 = arith.constant 0 : index
    %3 = vector.load %arg1[%c0_1, %c0_2] : memref<16x2xf32, #tpu.memory_space<vmem>>, vector<16x1xf32>
    %c0_3 = arith.constant 0 : index
    %c0_4 = arith.constant 0 : index
    %4 = vector.load %arg2[%c0_3, %c0_4] : memref<2x32xf32, #tpu.memory_space<vmem>>, vector<1x32xf32>
    %5 = vector.broadcast %3 : vector<16x1xf32> to vector<16x32xf32>
    %6 = vector.broadcast %4 : vector<1x32xf32> to vector<16x32xf32>
    %7 = arith.mulf %5, %6 : vector<16x32xf32>
    %8 = arith.addf %2, %7 : vector<16x32xf32>
    %c0_5 = arith.constant 0 : index
    %c1 = arith.constant 1 : index
    %9 = vector.load %arg1[%c0_5, %c1] : memref<16x2xf32, #tpu.memory_space<vmem>>, vector<16x1xf32>
    %c1_6 = arith.constant 1 : index
    %c0_7 = arith.constant 0 : index
    %10 = vector.load %arg2[%c1_6, %c0_7] : memref<2x32xf32, #tpu.memory_space<vmem>>, vector<1x32xf32>
    %11 = vector.broadcast %9 : vector<16x1xf32> to vector<16x32xf32>
    %12 = vector.broadcast %10 : vector<1x32xf32> to vector<16x32xf32>
    %13 = arith.mulf %11, %12 : vector<16x32xf32>
    %14 = arith.addf %8, %13 : vector<16x32xf32>
    %cst = arith.constant 0.000000e+00 : f32
    %15 = vector.broadcast %cst : f32 to vector<16x32xf32>
    %16 = arith.maximumf %14, %15 : vector<16x32xf32>
    %c0_8 = arith.constant 0 : index
    %c0_9 = arith.constant 0 : index
    %17 = vector.load %arg4[%c0_8, %c0_9] : memref<32x128xf32, #tpu.memory_space<vmem>>, vector<32x128xf32>
    %cst_10 = arith.constant dense<0.000000e+00> : vector<16x128xf32>
    %18 = tpu.matmul %16, %17, %cst_10 {dimension_numbers = #tpu.dot_dimension_numbers<[1], [0], [0], [1], [0, 0, 1, 1], [], []>} : vector<16x32xf32>, vector<32x128xf32>, vector<16x128xf32> -> vector<16x128xf32>
    %c0_11 = arith.constant 0 : index
    %c0_12 = arith.constant 0 : index
    %19 = vector.load %arg5[%c0_11, %c0_12] : memref<1x128xf32, #tpu.memory_space<vmem>>, vector<1x128xf32>
    %20 = vector.broadcast %19 : vector<1x128xf32> to vector<16x128xf32>
    %21 = arith.addf %18, %20 : vector<16x128xf32>
    %c0_13 = arith.constant 0 : index
    %c0_14 = arith.constant 0 : index
    %22 = vector.load %arg6[%c0_13, %c0_14] : memref<16x128xf32, #tpu.memory_space<vmem>>, vector<16x128xf32>
    tpu.vector_store %arg6[%c0_13, %c0_14], %21 {strides = array<i32>} : memref<16x128xf32, #tpu.memory_space<vmem>>, vector<16x128xf32>,
    return
  }
  func.func @transform_0(%arg0: i32) -> (i32, i32) {
    %c0_i32 = arith.constant 0 : i32
    %c0_i32_0 = arith.constant 0 : i32
    return %arg0, %c0_i32 : i32, i32
  }
  func.func @transform_1(%arg0: i32) -> (i32, i32) {
    %c0_i32 = arith.constant 0 : i32
    %c0_i32_0 = arith.constant 0 : i32
    %c0_i32_1 = arith.constant 0 : i32
    return %c0_i32, %c0_i32_0 : i32, i32
  }
  func.func @transform_2(%arg0: i32) -> (i32, i32) {
    %c0_i32 = arith.constant 0 : i32
    %c0_i32_0 = arith.constant 0 : i32
    %c0_i32_1 = arith.constant 0 : i32
    return %c0_i32, %c0_i32_0 : i32, i32
  }
  func.func @transform_3(%arg0: i32) -> (i32, i32) {
    %c0_i32 = arith.constant 0 : i32
    %c0_i32_0 = arith.constant 0 : i32
    %c0_i32_1 = arith.constant 0 : i32
    return %c0_i32, %c0_i32_0 : i32, i32
  }
  func.func @transform_4(%arg0: i32) -> (i32, i32) {
    %c0_i32 = arith.constant 0 : i32
    %c0_i32_0 = arith.constant 0 : i32
    %c0_i32_1 = arith.constant 0 : i32
    return %c0_i32, %c0_i32_0 : i32, i32
  }
  func.func @transform_5(%arg0: i32) -> (i32, i32) {
    %c0_i32 = arith.constant 0 : i32
    %c0_i32_0 = arith.constant 0 : i32
    return %arg0, %c0_i32 : i32, i32
  }
}

</mosaic_0001>

<bundles_post_ra>
// kernel: net_forward.1
= control target key start
LH: loop header
LB: loop body
LE: loop exit
PB: predicated region body
PF: predicated region fallthrough
CT: control target
= control target key end

     0   :  { %v117_v0 = vmov 1   ;;  %v118_v1 = vmov 0   ;;  %vm66_vm0 = vcmask 261120   ;;  %s185_s0 = inlined_call_operand.vmem [shape: f32[16,2], index: 0, kind: input, shape index: {}]   ;;  %s186_s1 = inlined_call_operand.vmem [shape: f32[2,32], index: 1, kind: input, shape index: {}]   ;;  %s187_s2 = inlined_call_operand.vmem [shape: f32[1,32], index: 2, kind: input, shape index: {}]   ;;  %s188_s4 = inlined_call_operand.vmem [shape: f32[1,128], index: 4, kind: input, shape index: {}]   ;;  %s189_s3 = inlined_call_operand.vmem [shape: f32[32,128], index: 3, kind: input, shape index: {}]   ;;  %s190_s5 = inlined_call_operand.vmem [shape: f32[16,128], index: 5, kind: output, shape index: {}]  }
   0x1   :  { %111 = vset.pattern.permute.xlu1 %v117_v0  ;;  %110 = vset.pattern.permute.xlu0 %v118_v1  ;;  %v24_v2 = vld [vmem:[%s185_s0] sm:$0xff]  ;;  %v25_v3 = vld [vmem:[%s185_s0 + $0x8] sm:$0xff]  ;;  %v61_v4 = vld [vmem:[%s189_s3 + $0x18] sm:$0xff] }
   0x2   :  { %44 = vperm.xlu1 %111, %v24_v2   ;;  %29 = vperm.xlu0 %110, %v24_v2   ;;  %v60_v5 = vld [vmem:[%s189_s3 + $0x10] sm:$0xff]  ;;  %v59_v6 = vld [vmem:[%s189_s3 + $0x8] sm:$0xff]  ;;  %v58_v7 = vld [vmem:[%s189_s3] sm:$0xff] }
   0x3   :  { %85 = vmatpush.msra.mxu0 %v61_v4  ;;  %104 = vmatpush.msra.mxu1 %v61_v4  ;;  %v113_v8 = vld [vmem:[%s186_s1 + $0x1] ss:$0 sm:$0xff]  ;;  %v115_v9 = vld [vmem:[%s186_s1] ss:$0 sm:$0xff] }
   0x4   :  { %v114_v10 = vld [vmem:[%s187_s2] ss:$0 sm:$0xff] }
   0x5   :  { %86 = vmatpush.msra.mxu0 %v60_v5  ;;  %105 = vmatpush.msra.mxu1 %v60_v5  ;;  %v116_v25 = vld [vmem:[%s188_s4] ss:$0 sm:$0xff] }
   0x7   :  { %87 = vmatpush.msra.mxu0 %v59_v6  ;;  %106 = vmatpush.msra.mxu1 %v59_v6 }
   0x9   :  { %88 = vmatpush.msra.mxu0 %v58_v7  ;;  %107 = vmatpush.msra.mxu1 %v58_v7 }
   0xa   :  { %48 = vperm.xlu1 %111, %v25_v3   ;;  %34 = vperm.xlu0 %110, %v25_v3  }
  0x12   :  { %112 = vset.pattern.permute.xlu0 %v117_v0 }
  0x74   :  { %v45_v11 = vpop.permute.xlu1 %44  ;;  %v30_v12 = vpop.permute.xlu0 %29 }
  0x75   :  { %v52_v13 = vmul.f32 %v113_v8, %v45_v11  ;;  %v38_v14 = vmul.f32 %v115_v9, %v30_v12 }
  0x77   :  { %v40_v15 = vadd.f32 %v114_v10, %v38_v14 }
  0x79   :  { %v54_v16 = vadd.f32 %v52_v13, %v40_v15 }
  0x7b   :  { %v56_v17 = vmax.f32 %v54_v16, 0.0 }
  0x7c   :  { %v49_v18 = vpop.permute.xlu1 %48  ;;  %v35_v19 = vpop.permute.xlu0 %34 }
  0x7d   :  { %v39_v20 = vmul.f32 %v115_v9, %v35_v19  ;;  %102 = vmatmul.msk.f32.vlgmr.msra.gmra.mxu0 %vm66_vm0, %v56_v17  ;;  %v53_v21 = vmul.f32 %v113_v8, %v49_v18 }
  0x7f   :  { %v41_v22 = vadd.f32 %v114_v10, %v39_v20 }
  0x81   :  { %v55_v23 = vadd.f32 %v53_v21, %v41_v22 }
  0x83   :  { %v57_v24 = vmax.f32 %v55_v23, 0.0 }
  0x85   :  { %103 = vmatmul.msk.f32.vlgmr.msra.gmra.mxu1 %vm66_vm0, %v57_v24 }
  0xfa   :  { %v90_v26 = vpop.f32.mrf.mxu0 }
  0xfb   :  { %v91_v27 = vadd.f32 %v116_v25, %v90_v26 }
  0xfd   :  { %96 = vst [vmem:[%s190_s5] sm:$0xff] %v91_v27 }
 0x102   :  { %v93_v28 = vpop.f32.mrf.mxu1 }
 0x103   :  { %v94_v29 = vadd.f32 %v116_v25, %v93_v28 }
 0x105   :  { %97 = vst [vmem:[%s190_s5 + $0x8] sm:$0xff] %v94_v29 }

</bundles_post_ra>
